<compile_context>
chip_gen: v6e
topology: v6e:2x2x1
jax: 0.10.0
libtpu: 0.0.40
codegen_flags: <defaults>
</compile_context>

<pallas_src>
import jax
import jax.numpy as jnp
from jax.experimental import pallas as pl
from jax.experimental.pallas import tpu as pltpu


def _mlp_kernel(xT_ref,
                w1_ref, b1_ref,
                w2_ref, b2_ref,
                w3_ref, b3_ref,
                w4_ref, b4_ref,
                o_ref):
    """Whole MLP for one batch tile, batch-on-lanes orientation.

    Every activation is (features, tile_m): the batch lives on the lane axis,
    so each matmul is a plain (out,in) @ (in,tile_m) MXU op with a dense output
    lane dim, bias/LeakyReLU touch lane-dense vregs, and the (1, tile_m) result
    stores densely with no masking.
    """
    leak = jnp.float32(0.2)

    h = xT_ref[...].astype(jnp.float32)                          # (F, tile_m)

    # Linear 1 + LeakyReLU(0.2)
    h = jnp.dot(w1_ref[...], h, preferred_element_type=jnp.float32) + b1_ref[...]
    h = jnp.maximum(h, leak * h)                                 # (16, tile_m)

    # Linear 2 + LeakyReLU(0.2)
    h = jnp.dot(w2_ref[...], h, preferred_element_type=jnp.float32) + b2_ref[...]
    h = jnp.maximum(h, leak * h)                                 # (8, tile_m)

    # Linear 3 + LeakyReLU(0.2)
    h = jnp.dot(w3_ref[...], h, preferred_element_type=jnp.float32) + b3_ref[...]
    h = jnp.maximum(h, leak * h)                                 # (4, tile_m)

    # Linear 4 + Sigmoid (exact; EUP has plenty of slack here)
    z = jnp.dot(w4_ref[...], h, preferred_element_type=jnp.float32) + b4_ref[...]
    o_ref[...] = (1.0 / (1.0 + jnp.exp(-z))).astype(o_ref.dtype)  # (1, tile_m)


def _round_up(n, m):
    return ((n + m - 1) // m) * m


def _tile_plan(B, tile_m_max):
    """Pick (tile_m, num_tiles, B_pad): 128-aligned, balanced tiles.

    Keeps >=2 grid steps whenever the batch allows so the 'parallel' grid axis
    can shard across v7x's two TensorCores; padding is bounded by roughly
    num_tiles*128 rows rather than a whole tile.
    """
    b128 = _round_up(max(int(B), 1), 128)
    tile_m_max = _round_up(max(int(tile_m_max), 128), 128)
    num_tiles = max(-(-b128 // tile_m_max), 2 if b128 >= 256 else 1)
    tile_m = _round_up(-(-b128 // num_tiles), 128)
    return tile_m, num_tiles, num_tiles * tile_m


def metric_discriminator_forward(x, params, *, tile_m=8192, x_dtype=None):
    """MetricDiscriminator forward. x: (B, F) float32; params in PyTorch layout.

    x_dtype: optionally jnp.bfloat16 to halve the HBM read of x (biggest win on
    v5e); matmul accumulation stays float32 inside the kernel.
    """
    (W1, b1), (W2, b2), (W3, b3), (W4, b4) = params
    B, F = x.shape

    tile_m, num_tiles, B_pad = _tile_plan(B, tile_m)

    # Batch-on-lanes dataflow: the kernel reads lane-dense (F, tile_m) blocks
    # of x^T so no in-kernel transpose (vxpose) is needed.  The transpose (and
    # the tail pad, which XLA fuses into the same copy) is one extra HBM pass
    # over x -- far cheaper than the MXU/XLU cycles it avoids.
    xT = x.T
    if x_dtype is not None:
        xT = xT.astype(x_dtype)
    if B_pad != B:
        xT = jnp.pad(xT, ((0, 0), (0, B_pad - B)))

    # Params stay in PyTorch nn.Linear layout (W: (out, in)) -- exactly what the
    # batch-on-lanes matmuls want.  Biases become (out, 1) to broadcast on lanes.
    kp = (W1, b1[:, None],      # (16, F),  (16, 1)
          W2, b2[:, None],      # (8, 16),  (8, 1)
          W3, b3[:, None],      # (4, 8),   (4, 1)
          W4, b4[:, None])      # (1, 4),   (1, 1)

    def _full(arr):
        # Tiny weights/biases: whole array per block; the constant block index
        # means Pallas only DMAs them on the first grid step.
        return pl.BlockSpec(arr.shape, lambda i: (0, 0))

    out = pl.pallas_call(
        _mlp_kernel,
        out_shape=jax.ShapeDtypeStruct((1, B_pad), jnp.float32),
        grid_spec=pltpu.PrefetchScalarGridSpec(
            num_scalar_prefetch=0,
            grid=(num_tiles,),
            in_specs=[pl.BlockSpec((F, tile_m), lambda i: (0, i))]
                     + [_full(a) for a in kp],
            out_specs=pl.BlockSpec((1, tile_m), lambda i: (0, i)),
        ),
        compiler_params=pltpu.CompilerParams(
            # Parallel grid axis -> sharded across v7x's two TensorCores.
            dimension_semantics=("parallel",),
        ),
    )(xT, *kp)

    # .view(-1) equivalent (drop the padded columns).
    return out.reshape(-1)[:B]


def init_params(key, input_size):
    """Deterministic synthetic init in PyTorch nn.Linear layout: W (out,in), b (out,)."""
    dims = [(input_size, 16), (16, 8), (8, 4), (4, 1)]
    params = []
    for fan_in, fan_out in dims:
        key, kw, kb = jax.random.split(key, 3)
        bound = 1.0 / jnp.sqrt(jnp.float32(fan_in))
        W = jax.random.uniform(kw, (fan_out, fan_in), jnp.float32, -bound, bound)
        b = jax.random.uniform(kb, (fan_out,), jnp.float32, -bound, bound)
        params.append((W, b))
    return params


def _reference_forward(x, params):
    """Pure-JAX reference of the same forward pass (PyTorch layout)."""
    h = x
    for idx, (W, b) in enumerate(params):
        h = h @ W.T + b
        if idx < 3:
            h = jnp.where(h > 0, h, 0.2 * h)
    return jax.nn.sigmoid(h).reshape(-1)


if __name__ == "__main__":
    key = jax.random.PRNGKey(0)
    k_x, k_p, k_x2 = jax.random.split(key, 3)

    input_size = 32
    params = init_params(k_p, input_size)

    # Case 1: tiny ragged batch -> single 128-row tile, exercises the pad path.
    batch = 10
    x = jax.random.normal(k_x, (batch, input_size), jnp.float32)
    out = jax.block_until_ready(metric_discriminator_forward(x, params))
    ref = _reference_forward(x, params)
    assert out.shape == (batch,)
    # Tolerance covers default (bf16-pass) MXU precision differences vs. XLA.
    assert jnp.allclose(out, ref, atol=2e-3, rtol=1e-3)

    # Case 2: batch large enough to produce >=2 grid steps (multi-tile path).
    batch2 = 300
    x2 = jax.random.normal(k_x2, (batch2, input_size), jnp.float32)
    out2 = jax.block_until_ready(metric_discriminator_forward(x2, params))
    ref2 = _reference_forward(x2, params)
    assert out2.shape == (batch2,)
    assert jnp.allclose(out2, ref2, atol=2e-3, rtol=1e-3)

    print("KERNEL_OK")
</pallas_src>

<mosaic_0001>
module attributes {stable_mosaic.version = 11 : i64} {
  func.func @_mlp_kernel(%arg0: i32, %arg1: memref<32x128xf32, #tpu.memory_space<vmem>>, %arg2: memref<16x32xf32, #tpu.memory_space<vmem>>, %arg3: memref<16x1xf32, #tpu.memory_space<vmem>>, %arg4: memref<8x16xf32, #tpu.memory_space<vmem>>, %arg5: memref<8x1xf32, #tpu.memory_space<vmem>>, %arg6: memref<4x8xf32, #tpu.memory_space<vmem>>, %arg7: memref<4x1xf32, #tpu.memory_space<vmem>>, %arg8: memref<1x4xf32, #tpu.memory_space<vmem>>, %arg9: memref<1x1xf32, #tpu.memory_space<vmem>>, %arg10: memref<1x128xf32, #tpu.memory_space<vmem>>) attributes {dimension_semantics = [#tpu.dimension_semantics<parallel>], iteration_bounds = array<i64: 1>, scalar_prefetch = 0 : i64, scratch_operands = 0 : i64, tpu.core_type = #tpu.core_type<tc>, window_params = [{transform_indices = @transform_0, window_bounds = array<i64: 32, 128>}, {pipeline_mode = #tpu.pipeline_mode<synchronous>, transform_indices = @transform_1, window_bounds = array<i64: 16, 32>}, {pipeline_mode = #tpu.pipeline_mode<synchronous>, transform_indices = @transform_2, window_bounds = array<i64: 16, 1>}, {pipeline_mode = #tpu.pipeline_mode<synchronous>, transform_indices = @transform_3, window_bounds = array<i64: 8, 16>}, {pipeline_mode = #tpu.pipeline_mode<synchronous>, transform_indices = @transform_4, window_bounds = array<i64: 8, 1>}, {pipeline_mode = #tpu.pipeline_mode<synchronous>, transform_indices = @transform_5, window_bounds = array<i64: 4, 8>}, {pipeline_mode = #tpu.pipeline_mode<synchronous>, transform_indices = @transform_6, window_bounds = array<i64: 4, 1>}, {pipeline_mode = #tpu.pipeline_mode<synchronous>, transform_indices = @transform_7, window_bounds = array<i64: 1, 4>}, {pipeline_mode = #tpu.pipeline_mode<synchronous>, transform_indices = @transform_8, window_bounds = array<i64: 1, 1>}, {transform_indices = @transform_9, window_bounds = array<i64: 1, 128>}]} {
    %c0 = arith.constant 0 : index
    %c0_0 = arith.constant 0 : index
    %0 = vector.load %arg1[%c0, %c0_0] : memref<32x128xf32, #tpu.memory_space<vmem>>, vector<32x128xf32>
    %c0_1 = arith.constant 0 : index
    %c0_2 = arith.constant 0 : index
    %1 = vector.load %arg2[%c0_1, %c0_2] : memref<16x32xf32, #tpu.memory_space<vmem>>, vector<16x32xf32>
    %cst = arith.constant dense<0.000000e+00> : vector<16x128xf32>
    %2 = tpu.matmul %1, %0, %cst {dimension_numbers = #tpu.dot_dimension_numbers<[1], [0], [0], [1], [0, 0, 1, 1], [], []>} : vector<16x32xf32>, vector<32x128xf32>, vector<16x128xf32> -> vector<16x128xf32>
    %c0_3 = arith.constant 0 : index
    %c0_4 = arith.constant 0 : index
    %3 = vector.load %arg3[%c0_3, %c0_4] : memref<16x1xf32, #tpu.memory_space<vmem>>, vector<16x1xf32>
    %4 = vector.broadcast %3 : vector<16x1xf32> to vector<16x128xf32>
    %5 = arith.addf %2, %4 : vector<16x128xf32>
    %cst_5 = arith.constant 2.000000e-01 : f32
    %6 = vector.broadcast %cst_5 : f32 to vector<16x128xf32>
    %7 = arith.mulf %6, %5 : vector<16x128xf32>
    %8 = arith.maximumf %5, %7 : vector<16x128xf32>
    %c0_6 = arith.constant 0 : index
    %c0_7 = arith.constant 0 : index
    %9 = vector.load %arg4[%c0_6, %c0_7] : memref<8x16xf32, #tpu.memory_space<vmem>>, vector<8x16xf32>
    %cst_8 = arith.constant dense<0.000000e+00> : vector<8x128xf32>
    %10 = tpu.matmul %9, %8, %cst_8 {dimension_numbers = #tpu.dot_dimension_numbers<[1], [0], [0], [1], [0, 0, 1, 1], [], []>} : vector<8x16xf32>, vector<16x128xf32>, vector<8x128xf32> -> vector<8x128xf32>
    %c0_9 = arith.constant 0 : index
    %c0_10 = arith.constant 0 : index
    %11 = vector.load %arg5[%c0_9, %c0_10] : memref<8x1xf32, #tpu.memory_space<vmem>>, vector<8x1xf32>
    %12 = vector.broadcast %11 : vector<8x1xf32> to vector<8x128xf32>
    %13 = arith.addf %10, %12 : vector<8x128xf32>
    %cst_11 = arith.constant 2.000000e-01 : f32
    %14 = vector.broadcast %cst_11 : f32 to vector<8x128xf32>
    %15 = arith.mulf %14, %13 : vector<8x128xf32>
    %16 = arith.maximumf %13, %15 : vector<8x128xf32>
    %c0_12 = arith.constant 0 : index
    %c0_13 = arith.constant 0 : index
    %17 = vector.load %arg6[%c0_12, %c0_13] : memref<4x8xf32, #tpu.memory_space<vmem>>, vector<4x8xf32>
    %cst_14 = arith.constant dense<0.000000e+00> : vector<4x128xf32>
    %18 = tpu.matmul %17, %16, %cst_14 {dimension_numbers = #tpu.dot_dimension_numbers<[1], [0], [0], [1], [0, 0, 1, 1], [], []>} : vector<4x8xf32>, vector<8x128xf32>, vector<4x128xf32> -> vector<4x128xf32>
    %c0_15 = arith.constant 0 : index
    %c0_16 = arith.constant 0 : index
    %19 = vector.load %arg7[%c0_15, %c0_16] : memref<4x1xf32, #tpu.memory_space<vmem>>, vector<4x1xf32>
    %20 = vector.broadcast %19 : vector<4x1xf32> to vector<4x128xf32>
    %21 = arith.addf %18, %20 : vector<4x128xf32>
    %cst_17 = arith.constant 2.000000e-01 : f32
    %22 = vector.broadcast %cst_17 : f32 to vector<4x128xf32>
    %23 = arith.mulf %22, %21 : vector<4x128xf32>
    %24 = arith.maximumf %21, %23 : vector<4x128xf32>
    %c0_18 = arith.constant 0 : index
    %c0_19 = arith.constant 0 : index
    %25 = vector.load %arg8[%c0_18, %c0_19] : memref<1x4xf32, #tpu.memory_space<vmem>>, vector<1x4xf32>
    %cst_20 = arith.constant dense<0.000000e+00> : vector<1x128xf32>
    %26 = tpu.matmul %25, %24, %cst_20 {dimension_numbers = #tpu.dot_dimension_numbers<[1], [0], [0], [1], [0, 0, 1, 1], [], []>} : vector<1x4xf32>, vector<4x128xf32>, vector<1x128xf32> -> vector<1x128xf32>
    %c0_21 = arith.constant 0 : index
    %c0_22 = arith.constant 0 : index
    %27 = vector.load %arg9[%c0_21, %c0_22] : memref<1x1xf32, #tpu.memory_space<vmem>>, vector<1x1xf32>
    %28 = vector.broadcast %27 : vector<1x1xf32> to vector<1x128xf32>
    %29 = arith.addf %26, %28 : vector<1x128xf32>
    %cst_23 = arith.constant 0.000000e+00 : f32
    %30 = vector.broadcast %cst_23 : f32 to vector<1x128xf32>
    %31 = arith.subf %30, %29 : vector<1x128xf32>
    %32 = math.exp %31 : vector<1x128xf32>
    %cst_24 = arith.constant 1.000000e+00 : f32
    %33 = vector.broadcast %cst_24 : f32 to vector<1x128xf32>
    %34 = arith.addf %33, %32 : vector<1x128xf32>
    %cst_25 = arith.constant 1.000000e+00 : f32
    %35 = vector.broadcast %cst_25 : f32 to vector<1x128xf32>
    %36 = arith.divf %35, %34 : vector<1x128xf32>
    %c0_26 = arith.constant 0 : index
    %c0_27 = arith.constant 0 : index
    %37 = vector.load %arg10[%c0_26, %c0_27] : memref<1x128xf32, #tpu.memory_space<vmem>>, vector<1x128xf32>
    tpu.vector_store %arg10[%c0_26, %c0_27], %36 {strides = array<i32>} : memref<1x128xf32, #tpu.memory_space<vmem>>, vector<1x128xf32>,
    return
  }
  func.func @transform_0(%arg0: i32) -> (i32, i32) {
    %c0_i32 = arith.constant 0 : i32
    %c0_i32_0 = arith.constant 0 : i32
    return %c0_i32, %arg0 : i32, i32
  }
  func.func @transform_1(%arg0: i32) -> (i32, i32) {
    %c0_i32 = arith.constant 0 : i32
    %c0_i32_0 = arith.constant 0 : i32
    %c0_i32_1 = arith.constant 0 : i32
    return %c0_i32, %c0_i32_0 : i32, i32
  }
  func.func @transform_2(%arg0: i32) -> (i32, i32) {
    %c0_i32 = arith.constant 0 : i32
    %c0_i32_0 = arith.constant 0 : i32
    %c0_i32_1 = arith.constant 0 : i32
    return %c0_i32, %c0_i32_0 : i32, i32
  }
  func.func @transform_3(%arg0: i32) -> (i32, i32) {
    %c0_i32 = arith.constant 0 : i32
    %c0_i32_0 = arith.constant 0 : i32
    %c0_i32_1 = arith.constant 0 : i32
    return %c0_i32, %c0_i32_0 : i32, i32
  }
  func.func @transform_4(%arg0: i32) -> (i32, i32) {
    %c0_i32 = arith.constant 0 : i32
    %c0_i32_0 = arith.constant 0 : i32
    %c0_i32_1 = arith.constant 0 : i32
    return %c0_i32, %c0_i32_0 : i32, i32
  }
  func.func @transform_5(%arg0: i32) -> (i32, i32) {
    %c0_i32 = arith.constant 0 : i32
    %c0_i32_0 = arith.constant 0 : i32
    %c0_i32_1 = arith.constant 0 : i32
    return %c0_i32, %c0_i32_0 : i32, i32
  }
  func.func @transform_6(%arg0: i32) -> (i32, i32) {
    %c0_i32 = arith.constant 0 : i32
    %c0_i32_0 = arith.constant 0 : i32
    %c0_i32_1 = arith.constant 0 : i32
    return %c0_i32, %c0_i32_0 : i32, i32
  }
  func.func @transform_7(%arg0: i32) -> (i32, i32) {
    %c0_i32 = arith.constant 0 : i32
    %c0_i32_0 = arith.constant 0 : i32
    %c0_i32_1 = arith.constant 0 : i32
    return %c0_i32, %c0_i32_0 : i32, i32
  }
  func.func @transform_8(%arg0: i32) -> (i32, i32) {
    %c0_i32 = arith.constant 0 : i32
    %c0_i32_0 = arith.constant 0 : i32
    %c0_i32_1 = arith.constant 0 : i32
    return %c0_i32, %c0_i32_0 : i32, i32
  }
  func.func @transform_9(%arg0: i32) -> (i32, i32) {
    %c0_i32 = arith.constant 0 : i32
    %c0_i32_0 = arith.constant 0 : i32
    return %c0_i32, %arg0 : i32, i32
  }
}

</mosaic_0001>

<bundles_post_ra>
// kernel: tpu_custom_call.1
= control target key start
LH: loop header
LB: loop body
LE: loop exit
PB: predicated region body
PF: predicated region fallthrough
CT: control target
= control target key end

     0   :  { %s675_s0 = inlined_call_operand.vmem [shape: f32[32,128], index: 0, kind: input, shape index: {}]   ;;  %s676_s1 = inlined_call_operand.hbm [shape: f32[16,32], index: 1, kind: input, shape index: {}]   ;;  %s677_s2 = inlined_call_operand.vmem [shape: f32[16,1], index: 2, kind: input, shape index: {}]   ;;  %s678_s3 = inlined_call_operand.hbm [shape: f32[8,16], index: 3, kind: input, shape index: {}]   ;;  %s679_s4 = inlined_call_operand.vmem [shape: f32[8,1], index: 4, kind: input, shape index: {}]   ;;  %s680_s5 = inlined_call_operand.vmem [shape: f32[4,8], index: 5, kind: input, shape index: {}]   ;;  %s681_s6 = inlined_call_operand.vmem [shape: f32[4,1], index: 6, kind: input, shape index: {}]   ;;  %s682_s7 = inlined_call_operand.vmem [shape: f32[1,4], index: 7, kind: input, shape index: {}]   ;;  %s683_s8 = inlined_call_operand.<no memory space> [shape: f32[1,1], index: 8, kind: input, shape index: {}]   ;;  %s684_s9 = inlined_call_operand.hbm [shape: f32[1,128], index: 9, kind: output, shape index: {}]  }
   0x1   :  { %v14_v0 = vstv %s683_s8 }
   0x2   :  { %15 = vst [vmem:[#allocation2] sm:$0x1] %v14_v0 }
   0x3   :  { %16 = vsyncpa [#allocation4], 0 }
   0x4   :  { %17 = vsyncpa [#allocation7], 0 }
   0x5   :  { %18 = vsyncpa [#allocation5], 0  ;;  %s570_s11 = smov [#allocation3]  }
   0x6   :  { %s26_s12 = sshll.u32 %s570_s11, 4  ;;  %s27_s12 = int_to_ptr.vmem [resolvable:$true] %s26_s12 }
   0x7   :  { %s512_s13 = scalar_lea.vmem %s27_s12, 256  ;;  %p517_p1 = scmp.lt.s32.totalorder %s27_s12, %s27_s12 }
   0x8   :  { %p513_p0 = scmp.ne.s32.totalorder %s27_s12, %s512_s13  ;;  %p518_p2 = scmp.lt.s32.totalorder %s512_s13, %s512_s13 }
   0xa   :  { %p519_p3 = por %p518_p2, %p517_p1 }
   0xc   :  { %p520_p4 = pnand %p519_p3, %p513_p0 }
   0xe   :  { %523 = shalt.err (!%p520_p4)
}
   0xf   :  { %s571_s14 = smov 128   ;;  %s572_s15 = smov 8  }
  0x10   :  { %32 = dma.hbm_to_vmem [thread:$0]  %s676_s1, 256, %s27_s12, [#allocation4], %s571_s14, %s571_s14, %s572_s15  }
  0x11   :  { %s573_s8 = smov [#allocation6]  }
  0x12   :  { %s41_s18 = sshll.u32 %s573_s8, 4  ;;  %s42_s18 = int_to_ptr.vmem [resolvable:$true] %s41_s18 }
  0x13   :  { %s532_s19 = scalar_lea.vmem %s42_s18, 128  ;;  %p537_p6 = scmp.lt.s32.totalorder %s42_s18, %s42_s18 }
  0x14   :  { %p533_p5 = scmp.ne.s32.totalorder %s42_s18, %s532_s19  ;;  %p538_p7 = scmp.lt.s32.totalorder %s532_s19, %s532_s19 }
  0x16   :  { %p539_p8 = por %p538_p7, %p537_p6 }
  0x18   :  { %p540_p9 = pnand %p539_p8, %p533_p5 }
  0x1a   :  { %543 = shalt.err (!%p540_p9)
}
  0x1b   :  { %44 = dma.hbm_to_vmem [thread:$0]  %s678_s3, 128, %s42_s18, [#allocation7]  }
  0x1c   :  { %564 = dma.done.wait [#allocation4], 256  }
  0x1d   :  { %565 = vsyncadd [#allocation4], 4294967040 }
  0x1e   :  { %566 = dma.done.wait [#allocation7], 128  }
  0x1f   :  { %567 = vsyncadd [#allocation7], 4294967168  ;;  %v574_v1 = vmov 0   ;;  %vm79_vm0 = vcmask 261120   ;;  %v64_v2 = vld [vmem:[%s675_s0 + $0x18] sm:$0xff]  ;;  %v63_v3 = vld [vmem:[%s675_s0 + $0x10] sm:$0xff]  ;;  %v338_v39 = vlaneseq }
  0x20   :  { %498 = vset.pattern.permute.xlu0 %v574_v1  ;;  %499 = vset.pattern.permute.xlu1 %v574_v1  ;;  %v65_v4 = vld [vmem:[#allocation3] sm:$0xff]  ;;  %v66_v9 = vld [vmem:[#allocation3 + $0x8] sm:$0xff]  ;;  %v332_v10 = vld [vmem:[#allocation2] sm:$0x1]  ;;  %v575_v11 = vmov 0.0   ;;  %vm576_vm1 = vmmov 0  }
  0x21   :  { %462 = vmatprep.subr.mxu0 %v64_v2  ;;  %v62_v5 = vld [vmem:[%s675_s0 + $0x8] sm:$0xff]  ;;  %470 = vmatprep.mubr.msk.f32.mxu0 %vm79_vm0, %v65_v4  ;;  %v61_v7 = vld [vmem:[%s675_s0] sm:$0xff]  ;;  %v165_v24 = vld [vmem:[#allocation6] sm:$0xff]  ;;  %vm172_vm2 = vcmask 130048   ;;  %vm255_vm3 = vcmask 64512   ;;  %vm346_vm4 = vcmask 1043456  }
  0x22   :  { %463 = vmatpush3.msra.mxu0 %v64_v2  ;;  %v68_v6 = vld [vmem:[%s677_s2 + $0x8] sm:$0xff]  ;;  %v67_v8 = vld [vmem:[%s677_s2] sm:$0xff]  ;;  %473 = vmatprep.subr.mxu1 %v575_v11  ;;  %vm342_vm5 = vcmask 31744   ;;  %v339_v40 = vshrl.u32 %v338_v39, 7 }
  0x23   :  { %464 = vmatprep.subr.mxu0 %v63_v3  ;;  %76 = vperm.xlu0 %498, %v68_v6   ;;  %v166_v12 = vld [vmem:[%s679_s4] sm:$0xff] }
  0x24   :  { %465 = vmatpush3.msra.mxu0 %v63_v3  ;;  %477 = vmatprep.mubr.msk.f32.mxu1 %vm576_vm1, %v575_v11  ;;  %v249_v13 = vld [vmem:[%s681_s6] sm:$0xf]  ;;  %v340_v41 = vsub.s32 0, %v339_v40 }
  0x25   :  { %466 = vmatprep.subr.mxu0 %v62_v5  ;;  %169 = vperm.xlu1 %499, %v166_v12   ;;  %v248_v31 = vld [vmem:[%s680_s5] sm:$0xf]  ;;  %s577_s5 = smov [#allocation8]  }
  0x26   :  { %467 = vmatpush3.msra.mxu0 %v62_v5  ;;  %v331_v38 = vld [vmem:[%s682_s7] sm:$0x1]  ;;  %s433_s15 = sshll.u32 %s577_s5, 4  ;;  %s434_s15 = int_to_ptr.vmem [resolvable:$true] %s433_s15 }
  0x27   :  { %468 = vmatprep.subr.mxu0 %v61_v7  ;;  %71 = vperm.xlu0 %498, %v67_v8   ;;  %s544_s7 = scalar_lea.vmem %s434_s15, 16  ;;  %s548_s16 = scalar_lea.vmem %s434_s15, 32 }
  0x28   :  { %469 = vmatpush3.msra.mxu0 %v61_v7  ;;  %p545_p10 = scmp.ne.s32.totalorder %s434_s15, %s544_s7  ;;  %p549_p11 = scmp.lt.s32.totalorder %s434_s15, %s434_s15 }
  0x29   :  { %471 = vmatmul.mubr.msk.f32.vlgmr.msra.gmra.mxu0 %vm79_vm0, %v66_v9  ;;  %485 = vmatprep.subr.mxu0 %v575_v11  ;;  %p550_p12 = scmp.lt.s32.totalorder %s548_s16, %s544_s7 }
  0x2a   :  { %487 = vmatprep.mubr.msk.f32.mxu0 %vm576_vm1, %v575_v11  ;;  %252 = vperm.xlu1 %499, %v249_v13  }
  0x2b   :  { %335 = vperm.xlu0 %498, %v332_v10   ;;  %p551_p13 = por %p550_p12, %p549_p11 }
  0x2d   :  { %p552_p0 = pnand %p551_p13, %p545_p10 }
  0x9e   :  { %v77_v14 = vpop.permute.xlu0 %76 }
  0xa0   :  { %v170_v25 = vpop.permute.xlu1 %169 }
  0xa2   :  { %v72_v17 = vpop.permute.xlu0 %71 }
  0xa5   :  { %v253_v32 = vpop.permute.xlu1 %252 }
  0xa6   :  { %v336_v42 = vpop.permute.xlu0 %335 }
  0xa7   :  { %v341_v43 = vrot.slane %v336_v42, %v340_v41 }
  0xe9   :  { %v472_v15 = vpop.f32.mrf.mxu0 }
  0xea   :  { %v158_v16 = vadd.f32 %v472_v15, %v77_v14 }
  0xeb   :  { %v152_v18 = vpop.f32.mrf.mxu0 }
  0xec   :  { %v162_v19 = vmul.f32 0.2, %v158_v16  ;;  %v153_v20 = vadd.f32 %v152_v18, %v72_v17 }
  0xee   :  { %v161_v21 = vmul.f32 0.2, %v153_v20  ;;  %v164_v22 = vmax.f32 %v158_v16, %v162_v19 }
  0xf0   :  { %v163_v23 = vmax.f32 %v153_v20, %v161_v21  ;;  %474 = vmatpush3.msra.mxu1 %v164_v22 }
  0xf1   :  { %475 = vmatprep.subr.mxu1 %v575_v11 }
  0xf2   :  { %476 = vmatpush3.msra.mxu1 %v163_v23 }
  0xf3   :  { %478 = vmatmul.mubr.msk.f32.vlgmr.msra.gmra.mxu1 %vm172_vm2, %v165_v24  ;;  %480 = vmatprep.subr.mxu1 %v575_v11 }
  0xf4   :  { %482 = vmatprep.mubr.msk.f32.mxu1 %vm576_vm1, %v575_v11 }
 0x1b3   :  { %v242_v26 = vpop.f32.mrf.mxu1 }
 0x1b4   :  { %v243_v27 = vadd.f32 %v242_v26, %v170_v25 }
 0x1b5   :  { %v479_v28 = vpop.f32.mrf.mxu1 }
 0x1b6   :  { %v246_v29 = vmul.f32 0.2, %v243_v27 }
 0x1b8   :  { %v247_v30 = vmax.f32 %v243_v27, %v246_v29 }
 0x1ba   :  { %481 = vmatpush3.msra.mxu1 %v247_v30 }
 0x1bb   :  { %483 = vmatmul.mubr.msk.f32.vlgmr.msra.gmra.mxu1 %vm255_vm3, %v248_v31 }
 0x27b   :  { %v325_v33 = vpop.f32.mrf.mxu1 }
 0x27c   :  { %v326_v34 = vadd.f32 %v325_v33, %v253_v32 }
 0x27d   :  { %v484_v35 = vpop.f32.mrf.mxu1 }
 0x27e   :  { %v329_v36 = vmul.f32 0.2, %v326_v34 }
 0x280   :  { %v330_v37 = vmax.f32 %v326_v34, %v329_v36 }
 0x282   :  { %486 = vmatpush3.msk.msra.mxu0 %vm346_vm4, %v330_v37 }
 0x283   :  { %488 = vmatmul.mubr.msk.f32.vlgmr.msra.gmra.mxu0 %vm342_vm5, %v331_v38 }
 0x343   :  { %v416_v44 = vpop.f32.mrf.mxu0 }
 0x344   :  { %v417_v45 = vadd.f32 %v416_v44, %v341_v43 }
 0x345   :  { %v489_v46 = vpop.f32.mrf.mxu0 }
 0x346   :  { %v420_v47 = vsub.f32 0.0, %v417_v45 }
 0x348   :  { %v421_v48 = vmul.f32 1.442695, %v420_v47 }
 0x34a   :  { %500 = vpow2.f32 %v421_v48 }
 0x357   :  { %v501_v49 = vpop.eup %500 }
 0x358   :  { %v423_v50 = vadd.f32 1.0, %v501_v49 }
 0x35a   :  { %502 = vrcp.f32 %v423_v50 }
 0x367   :  { %v503_v51 = vpop.eup %502 }
 0x368   :  { %426 = vst [vmem:[#allocation8] sm:$0x1] %v503_v51 }
 0x369   :  { %555 = shalt.err (!%p552_p0)
}
 0x36a   :  { %436 = dma.vmem_to_hbm [thread:$0]  %s434_s15, 16, %s684_s9, [#allocation5]  }
 0x36b   :  { %568 = dma.done.wait [#allocation5], 16  }
 0x36c   :  { %569 = vsyncadd [#allocation5], 4294967280 }
 0x36d   :  { %440 = vsyncpa [#allocation4], 1 }
 0x36e   :  { %441 = vsyncpa [#allocation7], 1 }
 0x36f   :  { %442 = vsyncpa [#allocation5], 1 }

</bundles_post_ra>
